<compile_context>
chip_gen: v7x
topology: tpu7x:2x2x1
jax: 0.10.0
libtpu: 0.0.40
codegen_flags: <defaults>
</compile_context>

<pallas_src>
import functools

import jax
import jax.numpy as jnp
from jax.experimental import pallas as pl
from jax.experimental.pallas import tpu as pltpu

_LANES = 128
_SUBLANES = 8
_BLOCK_ROWS = 512          # 512 * 128 * 4 B = 256 KiB per f32 block


def _padded_rows(total_width):
    """Rows of a lane/sublane-dense (rows, 128) slab holding `total_width` gates."""
    rows = pl.cdiv(total_width, _LANES)
    rows = pl.cdiv(rows, _SUBLANES) * _SUBLANES          # sublane-dense (multiple of 8)
    if rows > _BLOCK_ROWS:                               # keep grid blocks evenly divisible
        rows = pl.cdiv(rows, _BLOCK_ROWS) * _BLOCK_ROWS
    return int(rows)


def _gate_kernel(w_ref, u_ref, o_ref, *, T, base, training):
    """w_ref/u_ref/o_ref: VMEM (rows, 128) float32 tiles."""
    eps = 1e-20
    # gumbel noise from uniform samples (same formula as sample_gumbel)
    gumbel = -jnp.log(-jnp.log(u_ref[...] + eps) + eps)
    y0 = w_ref[...] + gumbel + base

    if training:
        # gumbel_softmax_sample: sigmoid((w + gumbel + base) / T)
        o_ref[...] = jax.nn.sigmoid(y0 * (1.0 / T)).astype(o_ref.dtype)
    else:
        # hard_concrete forward value: sigmoid(z) >= 0.5  <=>  z >= 0, and 1/T > 0
        # preserves sign, so skip the sigmoid and the divide entirely.
        # (straight-through estimator only affects gradients, not the forward value)
        o_ref[...] = (y0 >= 0.0).astype(o_ref.dtype)


def simplified_gate_forward(weights_2d, uniform_2d, *, T=0.4, base=3.0, training=False):
    """weights_2d / uniform_2d: (rows, 128) float32, rows a multiple of 8."""
    rows, lanes = weights_2d.shape
    assert lanes == _LANES and uniform_2d.shape == weights_2d.shape
    kernel = functools.partial(
        _gate_kernel, T=float(T), base=float(base), training=bool(training)
    )
    out_shape = jax.ShapeDtypeStruct((rows, lanes), jnp.float32)

    if rows <= _BLOCK_ROWS:
        # Single full-array VMEM block: no grid / pipeline bookkeeping for a tiny,
        # overhead-dominated elementwise kernel.
        return pl.pallas_call(
            kernel,
            out_shape=out_shape,
            in_specs=[
                pl.BlockSpec(memory_space=pltpu.MemorySpace.VMEM),
                pl.BlockSpec(memory_space=pltpu.MemorySpace.VMEM),
            ],
            out_specs=pl.BlockSpec(memory_space=pltpu.MemorySpace.VMEM),
        )(weights_2d, uniform_2d)

    # Very wide gate stacks: tile rows; blocks are independent -> "parallel"
    # (lets the two TensorCores on v7x split the rows).
    spec = pl.BlockSpec((_BLOCK_ROWS, _LANES), lambda i: (i, 0))
    return pl.pallas_call(
        kernel,
        out_shape=out_shape,
        grid_spec=pl.GridSpec(
            grid=(rows // _BLOCK_ROWS,),
            in_specs=[spec, spec],
            out_specs=spec,
        ),
        compiler_params=pltpu.CompilerParams(dimension_semantics=("parallel",)),
    )(weights_2d, uniform_2d)


class SimplifiedGate:
    """JAX/Pallas port of Simplified_Gate. Parameters initialized deterministically."""

    def __init__(self, structure, T=0.4, base=3.0, key=None):
        self.structure = list(structure)
        self.T = float(T)
        self.base = float(base)
        self.total = sum(self.structure)
        key = jax.random.PRNGKey(0) if key is None else key
        ws = []
        for width in self.structure:
            key, sub = jax.random.split(key)
            # matches nn.Parameter(torch.randn(width)) distribution-wise
            ws.append(jax.random.normal(sub, (width,), dtype=jnp.float32))
        flat = jnp.concatenate(ws, axis=0)
        # glue: pad + reshape into a lane/sublane-dense (rows, 128) slab
        self.rows = _padded_rows(self.total)
        flat = jnp.pad(flat, (0, self.rows * _LANES - self.total))
        self.weights_2d = flat.reshape(self.rows, _LANES)

    def _uniform(self, seed):
        # Host-side PRNG (distributional equivalent of torch.rand), lane-dense layout.
        return jax.random.uniform(
            jax.random.PRNGKey(seed), (self.rows, _LANES), dtype=jnp.float32
        )

    def __call__(self, seed=0, training=False):
        out2d = simplified_gate_forward(
            self.weights_2d, self._uniform(seed),
            T=self.T, base=self.base, training=training,
        )
        return out2d.reshape(-1)[: self.total]   # like torch.cat(outputs, dim=0)

    def resource_output(self, seed=0):
        # gumbel_softmax_sample followed by hard_concrete (same forward value as eval)
        return self.__call__(seed=seed, training=False)

    def transform_output(self, inputs):
        arch_vector = []
        start = 0
        for w in self.structure:
            arch_vector.append(inputs[start:start + w])
            start += w
        return arch_vector

    # TODO(synk): straight-through gradient of hard_concrete (forward value only here).


if __name__ == "__main__":
    # small shapes consistent with the module: 3 gate groups, total width 128
    structure = [32, 64, 32]
    gate = SimplifiedGate(structure, T=0.4, base=3.0, key=jax.random.PRNGKey(0))

    out_eval = gate(seed=123, training=False)     # hard {0,1} gates
    out_train = gate(seed=123, training=True)     # soft sigmoid gates
    jax.block_until_ready(out_eval)
    jax.block_until_ready(out_train)

    assert out_eval.shape == (sum(structure),)
    assert out_train.shape == (sum(structure),)
    # eval output must be exactly binary
    assert bool(jnp.all((out_eval == 0.0) | (out_eval == 1.0)))
    # train output must lie in [0, 1]
    assert bool(jnp.all((out_train >= 0.0) & (out_train <= 1.0)))

    # pure-JAX reference with the same uniform noise
    eps = 1e-20
    u_flat = gate._uniform(123).reshape(-1)[: gate.total]
    w_flat = gate.weights_2d.reshape(-1)[: gate.total]
    ref_gumbel = -jnp.log(-jnp.log(u_flat + eps) + eps)
    ref_soft = jax.nn.sigmoid((w_flat + ref_gumbel + gate.base) / gate.T)
    ref_hard = (ref_soft >= 0.5).astype(jnp.float32)

    assert bool(jnp.allclose(out_train, ref_soft, rtol=1e-3, atol=1e-3))
    # allow at most ~1% boundary disagreement from transcendental rounding differences
    assert float(jnp.mean((out_eval == ref_hard).astype(jnp.float32))) >= 0.99

    # transform_output splits back into per-group vectors
    parts = gate.transform_output(out_eval)
    assert [p.shape[0] for p in parts] == structure

    # resource_output matches the eval forward value
    res = gate.resource_output(seed=123)
    assert bool(jnp.all(res == out_eval))

    print("KERNEL_OK")
</pallas_src>

<mosaic_0001>
module attributes {stable_mosaic.version = 11 : i64} {
  func.func @_gate_kernel(%arg0: memref<8x128xf32, #tpu.memory_space<vmem>>, %arg1: memref<8x128xf32, #tpu.memory_space<vmem>>, %arg2: memref<8x128xf32, #tpu.memory_space<vmem>>) attributes {dimension_semantics = [], scalar_prefetch = 0 : i64, scratch_operands = 0 : i64, tpu.core_type = #tpu.core_type<tc>} {
    %c0 = arith.constant 0 : index
    %c0_0 = arith.constant 0 : index
    %0 = vector.load %arg1[%c0, %c0_0] : memref<8x128xf32, #tpu.memory_space<vmem>>, vector<8x128xf32>
    %cst = arith.constant 9.99999968E-21 : f32
    %1 = vector.broadcast %cst : f32 to vector<8x128xf32>
    %2 = arith.addf %0, %1 : vector<8x128xf32>
    %3 = math.log %2 : vector<8x128xf32>
    %cst_1 = arith.constant 0.000000e+00 : f32
    %4 = vector.broadcast %cst_1 : f32 to vector<8x128xf32>
    %5 = arith.subf %4, %3 : vector<8x128xf32>
    %cst_2 = arith.constant 9.99999968E-21 : f32
    %6 = vector.broadcast %cst_2 : f32 to vector<8x128xf32>
    %7 = arith.addf %5, %6 : vector<8x128xf32>
    %8 = math.log %7 : vector<8x128xf32>
    %cst_3 = arith.constant 0.000000e+00 : f32
    %9 = vector.broadcast %cst_3 : f32 to vector<8x128xf32>
    %10 = arith.subf %9, %8 : vector<8x128xf32>
    %c0_4 = arith.constant 0 : index
    %c0_5 = arith.constant 0 : index
    %11 = vector.load %arg0[%c0_4, %c0_5] : memref<8x128xf32, #tpu.memory_space<vmem>>, vector<8x128xf32>
    %12 = arith.addf %11, %10 : vector<8x128xf32>
    %cst_6 = arith.constant 3.000000e+00 : f32
    %13 = vector.broadcast %cst_6 : f32 to vector<8x128xf32>
    %14 = arith.addf %12, %13 : vector<8x128xf32>
    %cst_7 = arith.constant 0.000000e+00 : f32
    %15 = vector.broadcast %cst_7 : f32 to vector<8x128xf32>
    %16 = arith.cmpf oge, %14, %15 : vector<8x128xf32>
    %17 = arith.extui %16 : vector<8x128xi1> to vector<8x128xi32>
    %18 = arith.sitofp %17 : vector<8x128xi32> to vector<8x128xf32>
    %c0_8 = arith.constant 0 : index
    %c0_9 = arith.constant 0 : index
    %19 = vector.load %arg2[%c0_8, %c0_9] : memref<8x128xf32, #tpu.memory_space<vmem>>, vector<8x128xf32>
    tpu.vector_store %arg2[%c0_8, %c0_9], %18 {strides = array<i32>} : memref<8x128xf32, #tpu.memory_space<vmem>>, vector<8x128xf32>,
    return
  }
}

</mosaic_0001>

<bundles_post_ra>
// kernel: tpu_custom_call.1
= control target key start
LH: loop header
LB: loop body
LE: loop exit
PB: predicated region body
PF: predicated region fallthrough
CT: control target
= control target key end

     0   :  { %7 = vsyncpa [#allocation3], 0  ;;  %s204_s0 = inlined_call_operand.hbm [shape: f32[8,128], index: 0, kind: input, shape index: {}]   ;;  %s205_s1 = inlined_call_operand.hbm [shape: f32[8,128], index: 1, kind: input, shape index: {}]   ;;  %s206_s2 = inlined_call_operand.hbm [shape: f32[8,128], index: 2, kind: output, shape index: {}]  }
   0x1   :  { %8 = vsyncpa [#allocation6], 0 }
   0x2   :  { %9 = vsyncpa [#allocation4], 0  ;;  %s149_s9 = smov [#allocation2]   ;;  %s150_s11 = smov [#allocation5]  }
   0x3   :  { %s16_s10 = sshll.u32 %s149_s9, 4  ;;  %s26_s12 = sshll.u32 %s150_s11, 4  ;;  %s17_s10 = int_to_ptr.vmem [resolvable:$true] %s16_s10  ;;  %s27_s12 = int_to_ptr.vmem [resolvable:$true] %s26_s12 }
   0x4   :  { %s77_s15 = scalar_lea.hbm %s204_s0, 128 }
   0x5   :  { %p78_p0 = scmp.ne.s32.totalorder %s204_s0, %s77_s15  ;;  %p81_p1 = scmp.lt.u32.totalorder %s77_s15, %s204_s0 }
   0x7   :  { %p83_p2 = pnand %p81_p1, %p78_p0 }
   0x9   :  { %86 = shalt.err (!%p83_p2)
}
   0xa   :  { %s87_s20 = scalar_lea.vmem %s17_s10, 128  ;;  %p92_p4 = scmp.lt.s32.totalorder %s17_s10, %s17_s10 }
   0xb   :  { %p88_p3 = scmp.ne.s32.totalorder %s17_s10, %s87_s20  ;;  %p93_p5 = scmp.lt.s32.totalorder %s87_s20, %s87_s20 }
   0xd   :  { %p94_p6 = por %p93_p5, %p92_p4 }
   0xf   :  { %p95_p7 = pnand %p94_p6, %p88_p3 }
  0x11   :  { %98 = shalt.err (!%p95_p7)
}
  0x12   :  { %19 = dma.hbm_to_vmem [thread:$0]  %s204_s0, 128, %s17_s10, [#allocation3]  }
  0x13   :  { %s99_s25 = scalar_lea.hbm %s205_s1, 128 }
  0x14   :  { %p100_p8 = scmp.ne.s32.totalorder %s205_s1, %s99_s25  ;;  %p103_p9 = scmp.lt.u32.totalorder %s99_s25, %s205_s1 }
  0x16   :  { %p105_p10 = pnand %p103_p9, %p100_p8 }
  0x18   :  { %108 = shalt.err (!%p105_p10)
}
  0x19   :  { %s109_s30 = scalar_lea.vmem %s27_s12, 128  ;;  %p114_p12 = scmp.lt.s32.totalorder %s27_s12, %s27_s12 }
  0x1a   :  { %p110_p11 = scmp.ne.s32.totalorder %s27_s12, %s109_s30  ;;  %p115_p13 = scmp.lt.s32.totalorder %s109_s30, %s109_s30 }
  0x1c   :  { %p116_p0 = por %p115_p13, %p114_p12 }
  0x1e   :  { %p117_p1 = pnand %p116_p0, %p110_p11 }
  0x20   :  { %120 = shalt.err (!%p117_p1)
}
  0x21   :  { %29 = dma.hbm_to_vmem [thread:$0]  %s205_s1, 128, %s27_s12, [#allocation6]  }
  0x22   :  { %143 = dma.done.wait [#allocation3], 128  }
  0x23   :  { %144 = vsyncadd [#allocation3], 4294967168 }
  0x24   :  { %145 = dma.done.wait [#allocation6], 128  }
  0x25   :  { %146 = vsyncadd [#allocation6], 4294967168  ;;  %v36_v0 = vld [vmem:[#allocation5] sm:$0xff]  ;;  %v45_v8 = vld [vmem:[#allocation2] sm:$0xff]  ;;  %s151_s4 = smov [#allocation7]   ;;  %v152_v12 = vmov 0.0  }
  0x26   :  { %v37_v1 = vadd.f32 1e-20, %v36_v0  ;;  %s58_s5 = sshll.u32 %s151_s4, 4  ;;  %s59_s5 = int_to_ptr.vmem [resolvable:$true] %s58_s5 }
  0x27   :  { %s121_s1 = scalar_lea.vmem %s59_s5, 128  ;;  %p126_p3 = scmp.lt.s32.totalorder %s59_s5, %s59_s5 }
  0x28   :  { %73 = vlog2.f32 %v37_v1  ;;  %p122_p2 = scmp.ne.s32.totalorder %s59_s5, %s121_s1  ;;  %p127_p4 = scmp.lt.s32.totalorder %s121_s1, %s121_s1 }
  0x2a   :  { %p128_p5 = por %p127_p4, %p126_p3 }
  0x2c   :  { %p129_p6 = pnand %p128_p5, %p122_p2 }
  0x32   :  { %v74_v2 = vpop.eup %73 }
  0x33   :  { %v39_v3 = vmul.f32 0.6931472, %v74_v2 }
  0x35   :  { %v40_v4 = vsub.f32 0.0, %v39_v3 }
  0x37   :  { %v41_v5 = vadd.f32 1e-20, %v40_v4 }
  0x39   :  { %75 = vlog2.f32 %v41_v5 }
  0x43   :  { %v76_v6 = vpop.eup %75 }
  0x44   :  { %v43_v7 = vmul.f32 0.6931472, %v76_v6 }
  0x46   :  { %v44_v9 = vsub.f32 0.0, %v43_v7 }
  0x48   :  { %v46_v10 = vadd.f32 %v45_v8, %v44_v9 }
  0x4a   :  { %v47_v11 = vadd.f32 3.0, %v46_v10 }
  0x4c   :  { %vm48_vm0 = vcmp.ge.f32.partialorder %v47_v11, 0.0 }
  0x4d   :  { %v68_v13 = vsel %vm48_vm0, 1.0, %v152_v12 }
  0x4e   :  { %51 = vst [vmem:[#allocation7] sm:$0xff] %v68_v13 }
  0x4f   :  { %132 = shalt.err (!%p129_p6)
}
  0x50   :  { %s133_s8 = scalar_lea.hbm %s206_s2, 128 }
  0x51   :  { %p134_p7 = scmp.ne.s32.totalorder %s206_s2, %s133_s8  ;;  %p137_p8 = scmp.lt.u32.totalorder %s133_s8, %s206_s2 }
  0x53   :  { %p139_p9 = pnand %p137_p8, %p134_p7 }
  0x55   :  { %142 = shalt.err (!%p139_p9)
}
  0x56   :  { %61 = dma.vmem_to_hbm [thread:$0]  %s59_s5, 128, %s206_s2, [#allocation4]  }
  0x57   :  { %147 = dma.done.wait [#allocation4], 128  }
  0x58   :  { %148 = vsyncadd [#allocation4], 4294967168 }
  0x59   :  { %65 = vsyncpa [#allocation3], 1 }
  0x5a   :  { %66 = vsyncpa [#allocation6], 1 }
  0x5b   :  { %67 = vsyncpa [#allocation4], 1 }

</bundles_post_ra>
